<compile_context>
chip_gen: v6e
topology: v6e:2x2x1
jax: 0.10.0
libtpu: 0.0.40
codegen_flags: <defaults>
</compile_context>

<pallas_src>
import jax
import jax.numpy as jnp
from jax.experimental import pallas as pl
from jax.experimental.pallas import tpu as pltpu


_LANES = 1024        # lane-dense last dim (multiple of 128) -> unmasked vst
_TILE_ROWS = 1024    # 1024 * 1024 * 4B = 4 MiB per f32 tile


def _copy_kernel(x_ref, o_ref):
    # Pure pass-through of the current tile (the whole forward of MyNN).
    o_ref[...] = x_ref[...]


def _copy_2d(x2d):
    """Tiled identity copy of a (rows, _LANES) array through VMEM."""
    rows, lanes = x2d.shape

    if rows <= _TILE_ROWS:
        # Small input: single full-extent block (always layout-legal).
        block_rows = rows
        grid = (1,)
    else:
        # (1024, 1024) block is (8,128)-divisible, so a non-dividing row count
        # is legal: Pallas masks the final partial block automatically.
        block_rows = _TILE_ROWS
        grid = (pl.cdiv(rows, _TILE_ROWS),)

    return pl.pallas_call(
        _copy_kernel,
        out_shape=jax.ShapeDtypeStruct((rows, lanes), x2d.dtype),
        grid=grid,
        in_specs=[pl.BlockSpec((block_rows, lanes), lambda i: (i, 0))],
        out_specs=pl.BlockSpec((block_rows, lanes), lambda i: (i, 0)),
        input_output_aliases={0: 0},  # identity: write back into the same buffer
        compiler_params=pltpu.CompilerParams(
            dimension_semantics=("parallel",),   # no carried state -> shard across TCs
            vmem_limit_bytes=32 * 1024 * 1024,   # 4 live 4 MiB buffers << 32 MiB
        ),
    )(x2d)


@jax.jit
def mynn_forward(x):
    """Pallas implementation of MyNN.forward (identity).

    Works for any input rank (not just NCHW). When x.size is a multiple of
    1024 (typical for NN tensors) there is no padding, no slicing, and the
    kernel's read/write is the only HBM traffic.
    """
    orig_shape = x.shape
    total = x.size
    if total == 0:
        return x

    flat = x.reshape(-1)
    rem = total % _LANES

    if rem == 0:
        # Fast path: pure bitcast reshape -> kernel -> bitcast reshape back.
        out2d = _copy_2d(flat.reshape(total // _LANES, _LANES))
        return out2d.reshape(orig_shape)

    # Rare path: minimal pad to the next multiple of _LANES only (never up to
    # a tile multiple), then strip the tail.
    pad = _LANES - rem
    flat_p = jnp.pad(flat, (0, pad))
    out2d = _copy_2d(flat_p.reshape((total + pad) // _LANES, _LANES))
    return out2d.reshape(-1)[:total].reshape(orig_shape)


if __name__ == "__main__":
    key = jax.random.PRNGKey(0)
    # Small NCHW input consistent with a conv-style network input.
    # 2*4*16*16 = 2048 elements -> exercises the no-pad fast path.
    x = jax.random.normal(key, (2, 4, 16, 16), dtype=jnp.float32)

    y = mynn_forward(x)
    jax.block_until_ready(y)

    # Verify identity semantics (MyNN.forward returns x unchanged).
    assert y.shape == x.shape and y.dtype == x.dtype
    assert bool(jnp.all(y == x))

    print("KERNEL_OK")
</pallas_src>

<mosaic_0001>
module attributes {stable_mosaic.version = 11 : i64} {
  func.func @_copy_kernel(%arg0: i32, %arg1: memref<2x1024xf32, #tpu.memory_space<vmem>>, %arg2: memref<2x1024xf32, #tpu.memory_space<vmem>>) attributes {dimension_semantics = [#tpu.dimension_semantics<parallel>], iteration_bounds = array<i64: 1>, scalar_prefetch = 0 : i64, scratch_operands = 0 : i64, tpu.core_type = #tpu.core_type<tc>, window_params = [{transform_indices = @transform_0, window_bounds = array<i64: 2, 1024>}, {transform_indices = @transform_1, window_bounds = array<i64: 2, 1024>}]} {
    %c0 = arith.constant 0 : index
    %c0_0 = arith.constant 0 : index
    %0 = vector.load %arg1[%c0, %c0_0] : memref<2x1024xf32, #tpu.memory_space<vmem>>, vector<2x1024xf32>
    %c0_1 = arith.constant 0 : index
    %c0_2 = arith.constant 0 : index
    %1 = vector.load %arg2[%c0_1, %c0_2] : memref<2x1024xf32, #tpu.memory_space<vmem>>, vector<2x1024xf32>
    tpu.vector_store %arg2[%c0_1, %c0_2], %0 {strides = array<i32>} : memref<2x1024xf32, #tpu.memory_space<vmem>>, vector<2x1024xf32>,
    return
  }
  func.func @transform_0(%arg0: i32) -> (i32, i32) {
    %c0_i32 = arith.constant 0 : i32
    %c0_i32_0 = arith.constant 0 : i32
    return %arg0, %c0_i32 : i32, i32
  }
  func.func @transform_1(%arg0: i32) -> (i32, i32) {
    %c0_i32 = arith.constant 0 : i32
    %c0_i32_0 = arith.constant 0 : i32
    return %arg0, %c0_i32 : i32, i32
  }
}

</mosaic_0001>

<bundles_post_ra>
// kernel: mynn_forward.1
= control target key start
LH: loop header
LB: loop body
LE: loop exit
PB: predicated region body
PF: predicated region fallthrough
CT: control target
= control target key end

     0   :  { %s38_s0 = inlined_call_operand.vmem [shape: f32[2,1024], index: 0, kind: input, shape index: {}, may-alias: {0,1}]   ;;  %s39_s1 = inlined_call_operand.vmem [shape: f32[2,1024], index: 1, kind: output, shape index: {}, may-alias: {0,1}]  }
   0x1   :  { %v8_v0 = vld [vmem:[%s38_s0] sm:$0xff]  ;;  %v9_v1 = vld [vmem:[%s38_s0 + $0x8] sm:$0xff] }
   0x2   :  { %10 = vst [vmem:[%s39_s1] sm:$0xff] %v8_v0  ;;  %11 = vst [vmem:[%s39_s1 + $0x8] sm:$0xff] %v9_v1 }

</bundles_post_ra>
